<compile_context>
chip_gen: v5e
topology: v5e:2x2
jax: 0.10.0
libtpu: 0.0.40
codegen_flags: <defaults>
</compile_context>

<pallas_src>
import jax
import jax.numpy as jnp
from jax.experimental import pallas as pl
from jax.experimental.pallas import tpu as pltpu

VOLUME_FORCE = 2.0

_SMALL_ROW_BYTES = 1 << 18      # rows below 256 KiB: plain XLA fast path
_TARGET_BLOCK_BYTES = 1 << 21   # ~2 MiB blocks; 2 in + 2 out buffers ~= 8 MiB VMEM


def _fake_ansatz_kernel(x_ref, o_ref):
    v = x_ref[...]
    # folded constant: -(1/2 * v^2 * 2.0) == -(v * v); DMA-bound, VALU slots idle.
    o_ref[...] = -(v * v)


def _ceil_to(a: int, b: int) -> int:
    return ((a + b - 1) // b) * b


def _sublane_min(itemsize: int) -> int:
    # min second-to-last tile: 8 (f32) / 16 (bf16) / 32 (int8, fp8)
    return max(8, 32 // itemsize)


def _plan_zero_copy(n: int, itemsize: int):
    """Plan a zero-copy layout for a length-n row: reshape x to (B, S, L) and tile
    S by TS.  Returns (L, TS, S) or None if n has no clean lane-dense split."""
    if n % 128 != 0:
        return None
    sub_min = _sublane_min(itemsize)
    tier1 = tier2 = tier3 = None          # prefer widest lane within each tier
    lane = 128
    while lane <= min(n, 4096):
        if n % lane == 0:
            s = n // lane
            if s % sub_min == 0 and s >= 2 * sub_min:
                tier1 = (lane, s)         # can tile with >= 2 grid steps
            elif s % sub_min == 0:
                tier2 = (lane, s)
            elif s == 1:
                tier3 = (lane, s)         # single full-width block
        lane *= 2
    pick = tier1 or tier2 or tier3
    if pick is None:
        return None
    lane, s = pick
    if s == 1:
        return lane, 1, 1
    # Grow TS from the dtype minimum toward ~2 MiB blocks, keeping >= 2 grid
    # steps when possible (v7x megacore / pipelining).
    ts = sub_min
    while (s % (ts * 2) == 0
           and (ts * 2) * lane * itemsize <= _TARGET_BLOCK_BYTES
           and s // (ts * 2) >= 2):
        ts *= 2
    return lane, ts, s


def _plan_padded(n: int, itemsize: int):
    """Plan a padded lane-dense layout for awkward N.  Returns (L, TS, rows_pad)."""
    sub_min = _sublane_min(itemsize)
    lane = 512
    rows = _ceil_to(n, lane) // lane
    # ~2 MiB blocks, multiple of the dtype's minimum sublane tile
    ts = max(sub_min, (_TARGET_BLOCK_BYTES // (lane * itemsize)) // sub_min * sub_min)
    # don't tile far past the actual data
    ts = min(ts, _ceil_to(rows, sub_min))
    # keep >= 2 grid steps when there is room (v7x megacore)
    half = (rows // 2) // sub_min * sub_min
    if half >= sub_min:
        ts = min(ts, half)
    rows_pad = _ceil_to(rows, ts)
    return lane, ts, rows_pad


def fake_ansatz(x: jax.Array, *, force_pallas: bool = False) -> jax.Array:
    """x: (B, N) array -> (1, N) array, matching FakeAnsatz.forward."""
    _, N = x.shape
    dtype = x.dtype
    itemsize = jnp.dtype(dtype).itemsize

    # Tiny rows: pallas_call fixed cost (dispatch + pipeline prologue) dwarfs a
    # single fused multiply; let XLA fuse the slice + square.
    if not force_pallas and N * itemsize < _SMALL_ROW_BYTES:
        row = x[0][None, :]
        return -(row * row)

    plan = _plan_zero_copy(N, itemsize)
    if plan is not None:
        # Zero-copy path: reshape full x (free), select row 0 via the BlockSpec.
        lane, ts, s = plan
        x3 = x.reshape(x.shape[0], s, lane)
        out = pl.pallas_call(
            _fake_ansatz_kernel,
            out_shape=jax.ShapeDtypeStruct((s, lane), dtype),
            grid_spec=pl.GridSpec(
                grid=(s // ts,),
                in_specs=[pl.BlockSpec((pl.Squeezed(), ts, lane),
                                       lambda i: (0, i, 0))],
                out_specs=pl.BlockSpec((ts, lane), lambda i: (i, 0)),
            ),
            compiler_params=pltpu.CompilerParams(
                dimension_semantics=("parallel",),
            ),
        )(x3)
        return out.reshape(1, N)

    # Padded path (N not a clean multiple of 128): pad row 0 up to a lane-dense
    # slab, compute, and slice the tail off.
    lane, ts, rows_pad = _plan_padded(N, itemsize)
    n_pad = rows_pad * lane
    row = jnp.pad(x[0], (0, n_pad - N))
    dense = row.reshape(rows_pad, lane)
    out = pl.pallas_call(
        _fake_ansatz_kernel,
        out_shape=jax.ShapeDtypeStruct((rows_pad, lane), dtype),
        grid_spec=pl.GridSpec(
            grid=(rows_pad // ts,),
            in_specs=[pl.BlockSpec((ts, lane), lambda i: (i, 0))],
            out_specs=pl.BlockSpec((ts, lane), lambda i: (i, 0)),
        ),
        compiler_params=pltpu.CompilerParams(
            dimension_semantics=("parallel",),
        ),
    )(dense)
    return out.reshape(1, n_pad)[:, :N]


if __name__ == "__main__":
    key = jax.random.PRNGKey(0)
    k1, k2, k3 = jax.random.split(key, 3)

    def ref(x):
        return -(0.5 * (x[0][None, :] ** 2) * VOLUME_FORCE)

    # (1) Pallas zero-copy path: N multiple of 128 -> (S, L)=(16, 128), grid=(2,).
    x1 = jax.random.normal(k1, (2, 2048), dtype=jnp.float32)
    out1 = jax.block_until_ready(fake_ansatz(x1, force_pallas=True))
    assert out1.shape == (1, 2048), out1.shape
    assert jnp.allclose(out1, ref(x1), atol=1e-6, rtol=1e-6), "mismatch (zero-copy)"

    # (2) Pallas padded path: N not a multiple of 128.
    x2 = jax.random.normal(k2, (3, 1000), dtype=jnp.float32)
    out2 = jax.block_until_ready(fake_ansatz(x2, force_pallas=True))
    assert out2.shape == (1, 1000), out2.shape
    assert jnp.allclose(out2, ref(x2), atol=1e-6, rtol=1e-6), "mismatch (padded)"

    # (3) Default tiny-row fast path at the module's test-like size.
    x3 = jax.random.normal(k3, (2, 128), dtype=jnp.float32)
    out3 = jax.block_until_ready(fake_ansatz(x3))
    assert out3.shape == (1, 128), out3.shape
    assert jnp.allclose(out3, ref(x3), atol=1e-6, rtol=1e-6), "mismatch (fast path)"

    print("KERNEL_OK")
</pallas_src>

<mosaic_0001>
module attributes {stable_mosaic.version = 11 : i64} {
  func.func @_fake_ansatz_kernel(%arg0: i32, %arg1: memref<1x8x128xf32, #tpu.memory_space<vmem>>, %arg2: memref<8x128xf32, #tpu.memory_space<vmem>>) attributes {dimension_semantics = [#tpu.dimension_semantics<parallel>], iteration_bounds = array<i64: 2>, scalar_prefetch = 0 : i64, scratch_operands = 0 : i64, tpu.core_type = #tpu.core_type<tc>, window_params = [{transform_indices = @transform_0, window_bounds = array<i64: 1, 8, 128>}, {transform_indices = @transform_1, window_bounds = array<i64: 8, 128>}]} {
    %c0 = arith.constant 0 : index
    %c0_0 = arith.constant 0 : index
    %c0_1 = arith.constant 0 : index
    %0 = vector.load %arg1[%c0, %c0_0, %c0_1] : memref<1x8x128xf32, #tpu.memory_space<vmem>>, vector<1x8x128xf32>
    %1 = vector.shape_cast %0 : vector<1x8x128xf32> to vector<8x128xf32>
    %2 = arith.mulf %1, %1 : vector<8x128xf32>
    %cst = arith.constant 0.000000e+00 : f32
    %3 = vector.broadcast %cst : f32 to vector<8x128xf32>
    %4 = arith.subf %3, %2 : vector<8x128xf32>
    %c0_2 = arith.constant 0 : index
    %c0_3 = arith.constant 0 : index
    %5 = vector.load %arg2[%c0_2, %c0_3] : memref<8x128xf32, #tpu.memory_space<vmem>>, vector<8x128xf32>
    tpu.vector_store %arg2[%c0_2, %c0_3], %4 {strides = array<i32>} : memref<8x128xf32, #tpu.memory_space<vmem>>, vector<8x128xf32>,
    return
  }
  func.func @transform_0(%arg0: i32) -> (i32, i32, i32) {
    %c0_i32 = arith.constant 0 : i32
    %c0_i32_0 = arith.constant 0 : i32
    %c0_i32_1 = arith.constant 0 : i32
    return %c0_i32, %arg0, %c0_i32_0 : i32, i32, i32
  }
  func.func @transform_1(%arg0: i32) -> (i32, i32) {
    %c0_i32 = arith.constant 0 : i32
    %c0_i32_0 = arith.constant 0 : i32
    return %arg0, %c0_i32 : i32, i32
  }
}

</mosaic_0001>

<bundles_post_ra>
// kernel: tpu_custom_call.1
= control target key start
LH: loop header
LB: loop body
LE: loop exit
PB: predicated region body
PF: predicated region fallthrough
CT: control target
= control target key end

     0   :  { %6 = vsyncpa [#allocation3], 0  ;;  %s517_s0 = inlined_call_operand.hbm [shape: f32[2,16,128], index: 0, kind: input, shape index: {}]   ;;  %s518_s1 = inlined_call_operand.hbm [shape: f32[16,128], index: 1, kind: output, shape index: {}]  }
   0x1   :  { %8 = vsyncpa [#allocation3 + $0x1], 0 }
   0x2   :  { %9 = vsyncpa [#allocation4], 0 }
   0x3   :  { %11 = vsyncpa [#allocation4 + $0x1], 0  ;;  %s390_s6 = smov 0   ;;  %s392_s7 = smov 0  }
   0x4   :  { %s394_s8 = smov 0   ;;  %s396_s9 = smov 0  }
   0x5 LB: > { %s411_s10 = sadd.s32 4294967295, %s378_s9   ;;  %s224_s11 = sadd.s32 4294967294, %s378_s9   ;;  %s378_s9 = sphi %s396_s9, %s528_s9   ;;  %s374_s8 = sphi %s394_s8, %s527_s8   ;;  %s370_s7 = sphi %s392_s7, %s526_s7   ;;  %s366_s6 = sphi %s390_s6, %s525_s6  }
   0x6   : > { %s415_s12 = sadd.s32 1, %s378_s9   ;;  %s24_s13 = sadd.s32 1, %s374_s8 }
   0x7   : > { %s21_s14 = ssub.s32 %s378_s9, %s415_s12  ;;  %p31_p0 = scmp.ne.s32.totalorder %s374_s8, %s370_s7 }
   0x8   : > { %p22_p1 = scmp.eq.s32.totalorder %s21_s14, 0  ;;  %p32_p2 = scmp.eq.s32.totalorder %s378_s9, 0 }
   0x9   : > { %p37_p3 = scmp.ne.s32.totalorder %s370_s7, %s366_s6  ;;  %p38_p4 = scmp.eq.s32.totalorder %s411_s10, 0 }
   0xa   : > { %s427_s15 = scalar_select %p22_p1, %s374_s8, %s24_s13  }
   0xb   : > { %p429_p5 = por %p32_p2, %p31_p0  ;;  %p433_p6 = por %p38_p4, %p37_p3 }
   0xc   : > { %p61_p7 = scmp.eq.s32.totalorder %s411_s10, 1  ;;  %p67_p8 = scmp.eq.s32.totalorder %s224_s11, 1 }
   0xd   : > { %p248_p10 = scmp.lt.s32.totalorder %s378_s9, 2  ;;  %s87_s20 = sand.u32 1, %s374_s8  }
   0xe   : > { %p440_p11 = por %p61_p7, %p31_p0  ;;  %p444_p12 = por %p67_p8, %p37_p3 }
   0xf   : > { %s228_s21 = sshll.u32 %s378_s9, 3  ;;  %s227_s22 = sshll.u32 %s87_s20, 3 }
  0x10   : > { %s95_s25 = scalar_lea.hbm %s517_s0, %s228_s21  ;;  %s91_s27 = scalar_lea.vmem [#allocation2], %s227_s22 }
  0x11   : > { %s97_s26 = sshll.u32 %s95_s25, 4  ;;  %s99_s28 = sshll.u32 %s91_s27, 4  ;;  %s98_s26 = int_to_ptr.hbm [resolvable:$true] %s97_s26  ;;  %s100_s28 = int_to_ptr.vmem [resolvable:$true] %s99_s28 }
  0x12   : > { %p455_p13 = pnand %p248_p10, %p429_p5  ;;  %p229_p0 = scmp.ge.s32.totalorder %s378_s9, 1 }
  0x13   : > { %p104_p1 = scmp.lt.s32.totalorder %s378_s9, 3  ;;  %s88_s30 = scalar_lea.sflag [#allocation3], %s87_s20 }
  0x14   : > { %s282_s2 = sshra.s32 %s98_s26, 4  ;;  %p286_p3 = pneg %p455_p13  ;;  %s283_s2 = int_to_ptr.hbm [resolvable:$true] %s282_s2 }
  0x15   : > { %s284_s3 = scalar_lea.hbm %s283_s2, 8  ;;  %s289_s11 = scalar_lea.hbm %s517_s0, 32 }
  0x16   : > { %p285_p2 = scmp.ne.s32.totalorder %s283_s2, %s284_s3  ;;  %p290_p5 = scmp.lt.s32.totalorder %s283_s2, %s517_s0 }
  0x17   : > { %p291_p8 = scmp.lt.s32.totalorder %s289_s11, %s284_s3 }
  0x18   : > { %p287_p4 = pnand %p286_p3, %p285_p2 }
  0x19   : > { %p292_p10 = por %p291_p8, %p290_p5 }
  0x1a   : > { %p288_p7 = pneg %p287_p4 }
  0x1c   : > { %p293_p9 = pnand %p292_p10, %p288_p7 }
  0x1e   : > { %296 = shalt.err (!%p293_p9)
}
  0x1f   : > { %243 = dma.hbm_to_vmem [thread:$0]  (!%p455_p13), %s98_s26, 128, %s100_s28, %s88_s30  }
  0x20   : > { %p105_p2 = pnand %p229_p0, %p104_p1 }
  0x21   : > { %s476_s16 = sand.u32 (!%p105_p2), 1, %s370_s7  }
  0x22   : > { %108 = sbr.rel (%p105_p2) target bundleno = 55 (0x37), region = 24  ;;  %s230_s20 = sshll.u32 (!%p105_p2), %s476_s16, 3 }
  0x23   : > { %s111_s21 = scalar_lea.sflag (!%p105_p2), [#allocation3], %s476_s16  ;;  %s114_s22 = scalar_lea.vmem (!%p105_p2), [#allocation2], %s230_s20 }
  0x27   : > { %357 = dma.done.wait (%p433_p6), %s111_s21, 128  }
  0x28   : > { %359 = vsyncadd (%p433_p6), %s111_s21, 4294967168  ;;  %s233_s23 = sshll.u32 %s411_s10, 3  ;;  %v134_v0 = vld [vmem:[%s114_s22] sm:$0xff]  ;;  %s133_s27 = scalar_lea.vmem [#allocation5], %s230_s20 }
  0x29   : > { %s149_s26 = scalar_lea.hbm %s518_s1, %s233_s23  ;;  %s151_s28 = sshll.u32 %s133_s27, 4  ;;  %v135_v1 = vmul.f32 %v134_v0, %v134_v0  ;;  %s152_s28 = int_to_ptr.vmem [resolvable:$true] %s151_s28 }
  0x2a   : > { %s153_s29 = sshll.u32 %s149_s26, 4  ;;  %s139_s30 = scalar_lea.sflag [#allocation4], %s476_s16  ;;  %s154_s29 = int_to_ptr.hbm [resolvable:$true] %s153_s29 }
  0x2b   : > { %v136_v2 = vsub.f32 0.0, %v135_v1  ;;  %s326_s17 = sshra.s32 %s154_s29, 4  ;;  %s332_s4 = scalar_lea.hbm %s518_s1, 16  ;;  %s327_s17 = int_to_ptr.hbm [resolvable:$true] %s326_s17 }
  0x2c   : > { %s328_s2 = scalar_lea.hbm %s327_s17, 8  ;;  %p333_p0 = scmp.lt.s32.totalorder %s327_s17, %s518_s1 }
  0x2d   : > { %137 = vst [vmem:[%s133_s27] sm:$0xff] %v136_v2  ;;  %p329_p6 = scmp.ne.s32.totalorder %s327_s17, %s328_s2  ;;  %p334_p1 = scmp.lt.s32.totalorder %s332_s4, %s328_s2 }
  0x2f   : > { %p330_p9 = pnand %p329_p6, %p440_p11  ;;  %p335_p3 = por %p334_p1, %p333_p0 }
  0x31   : > { %p331_p13 = pneg %p330_p9 }
  0x33   : > { %p336_p4 = pnand %p335_p3, %p331_p13 }
  0x35   : > { %339 = shalt.err (!%p336_p4)
}
  0x36   : > { %238 = dma.vmem_to_hbm [thread:$0]  (%p440_p11), %s152_s28, 128, %s154_s29, %s139_s30  }
  0x37 PF: > { %s165_s13 = sand.u32 1, %s366_s6   ;;  %p524_p7 = scmp.ge.s32.totalorder %s378_s9, 2 }
  0x38   : > { %s166_s14 = scalar_lea.sflag [#allocation4], %s165_s13 }
  0x39   : > { %p245_p5 = pnand %p524_p7, %p444_p12 }
  0x3b   : > { %p246_p8 = pneg %p245_p5 }
  0x3d   : > { %361 = dma.done.wait (%p246_p8), %s166_s14, 128  }
  0x3e   : > { %363 = vsyncadd (%p246_p8), %s166_s14, 4294967168  ;;  %p14_p10 = scmp.ge.s32.totalorder %s415_s12, 4   ;;  %s525_s6 = smov %s370_s7 }
  0x3f   : > { %s526_s7 = smov %s374_s8  ;;  %s527_s8 = smov %s427_s15 }
  0x40   : > { %s528_s9 = smov %s415_s12  ;;  %16 = sbr.rel (!%p14_p10) target bundleno = 5 (0x5), region = 69 }
  0x45   :  { %172 = vsyncpa [#allocation3], 1 }
  0x46   :  { %174 = vsyncpa [#allocation3 + $0x1], 1 }
  0x47   :  { %175 = vsyncpa [#allocation4], 1 }
  0x48   :  { %177 = vsyncpa [#allocation4 + $0x1], 1 }

</bundles_post_ra>
